<compile_context>
chip_gen: v6e
topology: v6e:2x2x1
jax: 0.10.0
libtpu: 0.0.40
codegen_flags: <defaults>
</compile_context>

<pallas_src>
import functools

import jax
import jax.numpy as jnp
from jax import lax
from jax.experimental import pallas as pl
from jax.experimental.pallas import tpu as pltpu


# --------------------------------------------------------------------------
# Kernels
# --------------------------------------------------------------------------
def mlp_kernel(x_ref, w0_ref, b0_ref, w1_ref, b1_ref, w2_ref, b2_ref, o_ref,
               *, total_rows, compute_dtype):
    tb = x_ref.shape[0]
    # Zero the garbage rows of the (ragged) last batch tile so the discarded
    # output rows never see unspecified data.  Mask is all-true on full tiles
    # (one cheap select per vreg).
    row = lax.broadcasted_iota(jnp.int32, (tb, 1), 0)
    valid = total_rows - pl.program_id(0) * tb
    x = jnp.where(row < valid, x_ref[...], 0).astype(compute_dtype)

    # Layer 0: Linear(input_dim -> hidden) + ReLU (f32 accumulation on MXU).
    h = jnp.dot(x, w0_ref[...], preferred_element_type=jnp.float32)
    h = jnp.maximum(h + b0_ref[...], 0.0)
    # Layer 1: Linear(hidden -> hidden) + ReLU.
    h = jnp.dot(h.astype(compute_dtype), w1_ref[...],
                preferred_element_type=jnp.float32)
    h = jnp.maximum(h + b1_ref[...], 0.0)
    # Output layer: Linear(hidden -> output_dim), no activation.
    y = jnp.dot(h.astype(compute_dtype), w2_ref[...],
                preferred_element_type=jnp.float32)
    o_ref[...] = (y + b2_ref[...]).astype(o_ref.dtype)


def mlp_kernel_t(x_ref, w0_ref, b0_ref, w1_ref, b1_ref, w2_ref, b2_ref, o_ref,
                 *, total_cols, compute_dtype):
    # Lane-dense formulation: batch lives on the 128-lane axis.
    tb = x_ref.shape[1]
    col = lax.broadcasted_iota(jnp.int32, (x_ref.shape[0], tb), 1)
    valid = total_cols - pl.program_id(0) * tb
    x = jnp.where(col < valid, x_ref[...], 0).astype(compute_dtype)

    h = jnp.dot(w0_ref[...], x, preferred_element_type=jnp.float32)
    h = jnp.maximum(h + b0_ref[...], 0.0)
    h = jnp.dot(w1_ref[...], h.astype(compute_dtype),
                preferred_element_type=jnp.float32)
    h = jnp.maximum(h + b1_ref[...], 0.0)
    y = jnp.dot(w2_ref[...], h.astype(compute_dtype),
                preferred_element_type=jnp.float32)
    o_ref[...] = (y + b2_ref[...]).astype(o_ref.dtype)


# --------------------------------------------------------------------------
# Wrappers
# --------------------------------------------------------------------------
def _tile_rows(n, block, mult):
    """Batch tile: <= block, multiple of `mult`, and small enough that the
    1-D grid has >= 2 steps whenever the batch allows it (v7x megacore)."""
    tb = max(mult, (min(block, n) // mult) * mult)
    if pl.cdiv(n, tb) < 2 and n >= 2 * mult:
        tb = max(mult, pl.cdiv(pl.cdiv(n, 2), mult) * mult)
    return tb


@functools.partial(jax.jit, static_argnames=("block_b", "use_bf16", "out_dtype"))
def mlp_forward(x, params, *, block_b=8192, use_bf16=True, out_dtype=None):
    """Fused MLP forward.  x: [B, input_dim]; weights [in, out]; biases [1, out].

    block_b:  batch rows per grid step.  8K-32K recommended for large B; at
              these feature widths that is only a few MiB of VMEM per step,
              fine on v5e/v6e (128 MiB) and v7x (64 MiB per TC).
    use_bf16: bf16 matmuls (x cast in-kernel, f32 accumulation, f32 bias/ReLU
              epilogue).  Default True - the MXU is bf16-native on v5e/v6e/v7x.
    out_dtype: output dtype (default x.dtype).  bf16 halves output write
              traffic, mainly interesting on v5e (~820 GB/s, 1 vst slot).
    """
    B, in_dim = x.shape
    hid = params["w0"].shape[1]
    out_dim = params["w2"].shape[1]
    out_dtype = x.dtype if out_dtype is None else out_dtype

    compute_dtype = jnp.bfloat16 if use_bf16 else x.dtype
    # Weights are tiny and VMEM-resident, so casting them in the wrapper is
    # negligible.  x is deliberately NOT cast here (that would be a full extra
    # HBM read+write pass) - the kernel casts each streamed tile instead.
    w0 = params["w0"].astype(compute_dtype)
    w1 = params["w1"].astype(compute_dtype)
    w2 = params["w2"].astype(compute_dtype)
    b0 = params["b0"].astype(jnp.float32)
    b1 = params["b1"].astype(jnp.float32)
    b2 = params["b2"].astype(jnp.float32)

    mult = 16 if use_bf16 else 8          # bf16 packs 16 sublanes per vreg
    tb = _tile_rows(B, block_b, mult)
    grid = (pl.cdiv(B, tb),)              # ragged last block handled in-kernel

    # Weights/biases: same block every grid step -> resident in VMEM.
    resident = lambda shape: pl.BlockSpec(shape, lambda i: (0, 0))

    flops = 2 * B * (in_dim * hid + hid * hid + hid * out_dim)
    param_bytes = sum(a.size * a.dtype.itemsize for a in (w0, b0, w1, b1, w2, b2))
    bytes_accessed = (x.size * x.dtype.itemsize
                      + B * out_dim * jnp.dtype(out_dtype).itemsize
                      + param_bytes)

    kernel = functools.partial(mlp_kernel, total_rows=B,
                               compute_dtype=compute_dtype)

    return pl.pallas_call(
        kernel,
        out_shape=jax.ShapeDtypeStruct((B, out_dim), out_dtype),
        grid=grid,
        in_specs=[
            pl.BlockSpec((tb, in_dim), lambda i: (i, 0)),   # streamed activations
            resident(w0.shape), resident(b0.shape),
            resident(w1.shape), resident(b1.shape),
            resident(w2.shape), resident(b2.shape),
        ],
        out_specs=pl.BlockSpec((tb, out_dim), lambda i: (i, 0)),
        compiler_params=pltpu.CompilerParams(
            dimension_semantics=("parallel",),  # batch shards across TCs (v7x)
        ),
        cost_estimate=pl.CostEstimate(flops=flops, transcendentals=0,
                                      bytes_accessed=bytes_accessed),
    )(x, w0, b0, w1, b1, w2, b2)


@functools.partial(jax.jit, static_argnames=("block_b", "use_bf16", "out_dtype"))
def mlp_forward_t(xT, params, *, block_b=8192, use_bf16=True, out_dtype=None):
    """Lane-dense variant: xT is [input_dim, B]; returns yT [output_dim, B].

    Batch lives on the 128-lane axis, features on sublanes, so activation
    vregs are fully dense and output stores are unmasked.  Prefer this when
    the caller can produce/consume transposed layouts (transposing here in the
    wrapper would just add an HBM pass back).
    """
    in_dim, B = xT.shape
    hid = params["w0"].shape[1]
    out_dim = params["w2"].shape[1]
    out_dtype = xT.dtype if out_dtype is None else out_dtype

    compute_dtype = jnp.bfloat16 if use_bf16 else xT.dtype
    # Torch-layout weights [out, in] drive hT = W @ xT directly; transposed /
    # cast once here (tiny, VMEM-resident).
    w0 = params["w0"].T.astype(compute_dtype)               # [hid, in_dim]
    w1 = params["w1"].T.astype(compute_dtype)               # [hid, hid]
    w2 = params["w2"].T.astype(compute_dtype)               # [out_dim, hid]
    b0 = params["b0"].reshape(-1, 1).astype(jnp.float32)    # [hid, 1]
    b1 = params["b1"].reshape(-1, 1).astype(jnp.float32)
    b2 = params["b2"].reshape(-1, 1).astype(jnp.float32)

    LANE = 128
    tb = _tile_rows(B, block_b, LANE)
    grid = (pl.cdiv(B, tb),)

    resident = lambda shape: pl.BlockSpec(shape, lambda i: (0, 0))

    flops = 2 * B * (in_dim * hid + hid * hid + hid * out_dim)
    param_bytes = sum(a.size * a.dtype.itemsize for a in (w0, b0, w1, b1, w2, b2))
    bytes_accessed = (xT.size * xT.dtype.itemsize
                      + B * out_dim * jnp.dtype(out_dtype).itemsize
                      + param_bytes)

    kernel = functools.partial(mlp_kernel_t, total_cols=B,
                               compute_dtype=compute_dtype)

    return pl.pallas_call(
        kernel,
        out_shape=jax.ShapeDtypeStruct((out_dim, B), out_dtype),
        grid=grid,
        in_specs=[
            pl.BlockSpec((in_dim, tb), lambda i: (0, i)),   # streamed activations
            resident(w0.shape), resident(b0.shape),
            resident(w1.shape), resident(b1.shape),
            resident(w2.shape), resident(b2.shape),
        ],
        out_specs=pl.BlockSpec((out_dim, tb), lambda i: (0, i)),
        compiler_params=pltpu.CompilerParams(
            dimension_semantics=("parallel",),
        ),
        cost_estimate=pl.CostEstimate(flops=flops, transcendentals=0,
                                      bytes_accessed=bytes_accessed),
    )(xT, w0, b0, w1, b1, w2, b2)


# --------------------------------------------------------------------------
# Parameters / reference
# --------------------------------------------------------------------------
def init_params(key, input_dim, output_dim, hidden_dim=32):
    """Deterministic synthetic init (PyTorch-Linear-like uniform bounds).
    Weights stored as [in, out] (i.e. W^T of the torch layout)."""
    ks = jax.random.split(key, 6)

    def linear(kw, kb, fan_in, fan_out):
        bound = 1.0 / jnp.sqrt(fan_in)
        w = jax.random.uniform(kw, (fan_in, fan_out), jnp.float32, -bound, bound)
        b = jax.random.uniform(kb, (1, fan_out), jnp.float32, -bound, bound)
        return w, b

    w0, b0 = linear(ks[0], ks[1], input_dim, hidden_dim)
    w1, b1 = linear(ks[2], ks[3], hidden_dim, hidden_dim)
    w2, b2 = linear(ks[4], ks[5], hidden_dim, output_dim)
    return {"w0": w0, "b0": b0, "w1": w1, "b1": b1, "w2": w2, "b2": b2}


def mlp_reference(x, p):
    h = jnp.maximum(x @ p["w0"] + p["b0"], 0.0)
    h = jnp.maximum(h @ p["w1"] + p["b1"], 0.0)
    return h @ p["w2"] + p["b2"]


if __name__ == "__main__":
    key = jax.random.PRNGKey(0)
    k_x, k_p = jax.random.split(key)

    # 260 is deliberately NOT a multiple of any batch tile: exercises the
    # ragged last block (no wrapper-side padding pass anymore).
    batch, input_dim, hidden_dim, output_dim = 260, 16, 32, 8
    x = jax.random.normal(k_x, (batch, input_dim), dtype=jnp.float32)
    params = init_params(k_p, input_dim, output_dim, hidden_dim)

    ref = mlp_reference(x, params)

    # f32 matmul path: bit-for-bit semantics of the original module.
    out_f32 = jax.block_until_ready(
        mlp_forward(x, params, block_b=64, use_bf16=False))
    assert out_f32.shape == (batch, output_dim)
    assert jnp.allclose(out_f32, ref, atol=1e-5, rtol=1e-5)

    # Default path: bf16 matmuls (in-kernel cast), f32 accumulate / epilogue.
    out_bf16 = jax.block_until_ready(mlp_forward(x, params))
    assert out_bf16.shape == (batch, output_dim)
    assert jnp.allclose(out_bf16, ref, atol=5e-2, rtol=5e-2)

    # Lane-dense transposed variant (batch on the 128-lane axis).
    out_t = jax.block_until_ready(mlp_forward_t(x.T, params, block_b=128))
    assert out_t.shape == (output_dim, batch)
    assert jnp.allclose(out_t.T, ref, atol=5e-2, rtol=5e-2)

    print("KERNEL_OK")
</pallas_src>

<mosaic_0001>
module attributes {stable_mosaic.version = 11 : i64} {
  func.func @mlp_kernel(%arg0: i32, %arg1: memref<64x16xf32, #tpu.memory_space<vmem>>, %arg2: memref<16x32xf32, #tpu.memory_space<vmem>>, %arg3: memref<1x32xf32, #tpu.memory_space<vmem>>, %arg4: memref<32x32xf32, #tpu.memory_space<vmem>>, %arg5: memref<1x32xf32, #tpu.memory_space<vmem>>, %arg6: memref<32x8xf32, #tpu.memory_space<vmem>>, %arg7: memref<1x8xf32, #tpu.memory_space<vmem>>, %arg8: memref<64x8xf32, #tpu.memory_space<vmem>>) attributes {dimension_semantics = [#tpu.dimension_semantics<parallel>], iteration_bounds = array<i64: 5>, scalar_prefetch = 0 : i64, scratch_operands = 0 : i64, tpu.core_type = #tpu.core_type<tc>, window_params = [{transform_indices = @transform_0, window_bounds = array<i64: 64, 16>}, {pipeline_mode = #tpu.pipeline_mode<synchronous>, transform_indices = @transform_1, window_bounds = array<i64: 16, 32>}, {pipeline_mode = #tpu.pipeline_mode<synchronous>, transform_indices = @transform_2, window_bounds = array<i64: 1, 32>}, {pipeline_mode = #tpu.pipeline_mode<synchronous>, transform_indices = @transform_3, window_bounds = array<i64: 32, 32>}, {pipeline_mode = #tpu.pipeline_mode<synchronous>, transform_indices = @transform_4, window_bounds = array<i64: 1, 32>}, {pipeline_mode = #tpu.pipeline_mode<synchronous>, transform_indices = @transform_5, window_bounds = array<i64: 32, 8>}, {pipeline_mode = #tpu.pipeline_mode<synchronous>, transform_indices = @transform_6, window_bounds = array<i64: 1, 8>}, {transform_indices = @transform_7, window_bounds = array<i64: 64, 8>}]} {
    %0 = tpu.iota {dimensions = array<i32: 0>} : vector<64x1xi32>
    %c64_i32 = arith.constant 64 : i32
    %1 = arith.muli %arg0, %c64_i32 : i32
    %c260_i32 = arith.constant 260 : i32
    %2 = arith.subi %c260_i32, %1 : i32
    %3 = vector.broadcast %2 : i32 to vector<64x1xi32>
    %4 = arith.cmpi slt, %0, %3 : vector<64x1xi32>
    %c0 = arith.constant 0 : index
    %c0_0 = arith.constant 0 : index
    %5 = vector.load %arg1[%c0, %c0_0] : memref<64x16xf32, #tpu.memory_space<vmem>>, vector<64x16xf32>
    %c0_i32 = arith.constant 0 : i32
    %6 = arith.sitofp %c0_i32 : i32 to f32
    %7 = vector.shape_cast %4 : vector<64x1xi1> to vector<64x1xi1>
    %8 = vector.broadcast %7 : vector<64x1xi1> to vector<64x16xi1>
    %9 = vector.broadcast %6 : f32 to vector<64x16xf32>
    %10 = arith.select %8, %5, %9 : vector<64x16xi1>, vector<64x16xf32>
    %c0_1 = arith.constant 0 : index
    %c0_2 = arith.constant 0 : index
    %11 = vector.load %arg2[%c0_1, %c0_2] : memref<16x32xf32, #tpu.memory_space<vmem>>, vector<16x32xf32>
    %cst = arith.constant dense<0.000000e+00> : vector<64x32xf32>
    %12 = tpu.matmul %10, %11, %cst {dimension_numbers = #tpu.dot_dimension_numbers<[1], [0], [0], [1], [0, 0, 1, 1], [], []>} : vector<64x16xf32>, vector<16x32xf32>, vector<64x32xf32> -> vector<64x32xf32>
    %c0_3 = arith.constant 0 : index
    %c0_4 = arith.constant 0 : index
    %13 = vector.load %arg3[%c0_3, %c0_4] : memref<1x32xf32, #tpu.memory_space<vmem>>, vector<1x32xf32>
    %14 = vector.broadcast %13 : vector<1x32xf32> to vector<64x32xf32>
    %15 = arith.addf %12, %14 : vector<64x32xf32>
    %cst_5 = arith.constant 0.000000e+00 : f32
    %16 = vector.broadcast %cst_5 : f32 to vector<64x32xf32>
    %17 = arith.maximumf %15, %16 : vector<64x32xf32>
    %c0_6 = arith.constant 0 : index
    %c0_7 = arith.constant 0 : index
    %18 = vector.load %arg4[%c0_6, %c0_7] : memref<32x32xf32, #tpu.memory_space<vmem>>, vector<32x32xf32>
    %cst_8 = arith.constant dense<0.000000e+00> : vector<64x32xf32>
    %19 = tpu.matmul %17, %18, %cst_8 {dimension_numbers = #tpu.dot_dimension_numbers<[1], [0], [0], [1], [0, 0, 1, 1], [], []>} : vector<64x32xf32>, vector<32x32xf32>, vector<64x32xf32> -> vector<64x32xf32>
    %c0_9 = arith.constant 0 : index
    %c0_10 = arith.constant 0 : index
    %20 = vector.load %arg5[%c0_9, %c0_10] : memref<1x32xf32, #tpu.memory_space<vmem>>, vector<1x32xf32>
    %21 = vector.broadcast %20 : vector<1x32xf32> to vector<64x32xf32>
    %22 = arith.addf %19, %21 : vector<64x32xf32>
    %cst_11 = arith.constant 0.000000e+00 : f32
    %23 = vector.broadcast %cst_11 : f32 to vector<64x32xf32>
    %24 = arith.maximumf %22, %23 : vector<64x32xf32>
    %c0_12 = arith.constant 0 : index
    %c0_13 = arith.constant 0 : index
    %25 = vector.load %arg6[%c0_12, %c0_13] : memref<32x8xf32, #tpu.memory_space<vmem>>, vector<32x8xf32>
    %cst_14 = arith.constant dense<0.000000e+00> : vector<64x8xf32>
    %26 = tpu.matmul %24, %25, %cst_14 {dimension_numbers = #tpu.dot_dimension_numbers<[1], [0], [0], [1], [0, 0, 1, 1], [], []>} : vector<64x32xf32>, vector<32x8xf32>, vector<64x8xf32> -> vector<64x8xf32>
    %c0_15 = arith.constant 0 : index
    %c0_16 = arith.constant 0 : index
    %27 = vector.load %arg7[%c0_15, %c0_16] : memref<1x8xf32, #tpu.memory_space<vmem>>, vector<1x8xf32>
    %28 = vector.broadcast %27 : vector<1x8xf32> to vector<64x8xf32>
    %29 = arith.addf %26, %28 : vector<64x8xf32>
    %c0_17 = arith.constant 0 : index
    %c0_18 = arith.constant 0 : index
    %30 = vector.load %arg8[%c0_17, %c0_18] : memref<64x8xf32, #tpu.memory_space<vmem>>, vector<64x8xf32>
    tpu.vector_store %arg8[%c0_17, %c0_18], %29 {strides = array<i32>} : memref<64x8xf32, #tpu.memory_space<vmem>>, vector<64x8xf32>,
    return
  }
  func.func @transform_0(%arg0: i32) -> (i32, i32) {
    %c0_i32 = arith.constant 0 : i32
    %c0_i32_0 = arith.constant 0 : i32
    return %arg0, %c0_i32 : i32, i32
  }
  func.func @transform_1(%arg0: i32) -> (i32, i32) {
    %c0_i32 = arith.constant 0 : i32
    %c0_i32_0 = arith.constant 0 : i32
    %c0_i32_1 = arith.constant 0 : i32
    return %c0_i32, %c0_i32_0 : i32, i32
  }
  func.func @transform_2(%arg0: i32) -> (i32, i32) {
    %c0_i32 = arith.constant 0 : i32
    %c0_i32_0 = arith.constant 0 : i32
    %c0_i32_1 = arith.constant 0 : i32
    return %c0_i32, %c0_i32_0 : i32, i32
  }
  func.func @transform_3(%arg0: i32) -> (i32, i32) {
    %c0_i32 = arith.constant 0 : i32
    %c0_i32_0 = arith.constant 0 : i32
    %c0_i32_1 = arith.constant 0 : i32
    return %c0_i32, %c0_i32_0 : i32, i32
  }
  func.func @transform_4(%arg0: i32) -> (i32, i32) {
    %c0_i32 = arith.constant 0 : i32
    %c0_i32_0 = arith.constant 0 : i32
    %c0_i32_1 = arith.constant 0 : i32
    return %c0_i32, %c0_i32_0 : i32, i32
  }
  func.func @transform_5(%arg0: i32) -> (i32, i32) {
    %c0_i32 = arith.constant 0 : i32
    %c0_i32_0 = arith.constant 0 : i32
    %c0_i32_1 = arith.constant 0 : i32
    return %c0_i32, %c0_i32_0 : i32, i32
  }
  func.func @transform_6(%arg0: i32) -> (i32, i32) {
    %c0_i32 = arith.constant 0 : i32
    %c0_i32_0 = arith.constant 0 : i32
    %c0_i32_1 = arith.constant 0 : i32
    return %c0_i32, %c0_i32_0 : i32, i32
  }
  func.func @transform_7(%arg0: i32) -> (i32, i32) {
    %c0_i32 = arith.constant 0 : i32
    %c0_i32_0 = arith.constant 0 : i32
    return %arg0, %c0_i32 : i32, i32
  }
}

</mosaic_0001>

<bundles_post_ra>
// kernel: mlp_forward.1
= control target key start
LH: loop header
LB: loop body
LE: loop exit
PB: predicated region body
PF: predicated region fallthrough
CT: control target
= control target key end

     0   :  { %s1406_s24 = smov 0   ;;  %s1408_s25 = smov 0   ;;  %s1592_s0 = inlined_call_operand.vmem [shape: f32[260,16], index: 0, kind: input, shape index: {}]   ;;  %s1593_s1 = inlined_call_operand.vmem [shape: f32[16,32], index: 1, kind: input, shape index: {}]   ;;  %s1594_s2 = inlined_call_operand.vmem [shape: f32[1,32], index: 2, kind: input, shape index: {}]   ;;  %s1595_s3 = inlined_call_operand.vmem [shape: f32[32,32], index: 3, kind: input, shape index: {}]   ;;  %s1596_s4 = inlined_call_operand.vmem [shape: f32[1,32], index: 4, kind: input, shape index: {}]   ;;  %s1597_s5 = inlined_call_operand.vmem [shape: f32[32,8], index: 5, kind: input, shape index: {}]   ;;  %s1598_s6 = inlined_call_operand.vmem [shape: f32[1,8], index: 6, kind: input, shape index: {}]   ;;  %s1599_s7 = inlined_call_operand.vmem [shape: f32[260,8], index: 7, kind: output, shape index: {}]  }
   0x1   :  { %s1410_s26 = smov 0  }
   0x2 LB: > { %s1419_s27 = sadd.s32 4294967295, %s1332_s26   ;;  %s1421_s28 = sadd.s32 1, %s1332_s26   ;;  %s1332_s26 = sphi %s1410_s26, %s1606_s26   ;;  %s1328_s25 = sphi %s1408_s25, %s1605_s25   ;;  %s1324_s24 = sphi %s1406_s24, %s1604_s24  }
   0x3   : > { %s173_s29 = ssub.s32 %s1332_s26, %s1421_s28  ;;  %s176_s30 = sadd.s32 1, %s1328_s25 }
   0x4   : > { %p174_p0 = scmp.eq.s32.totalorder %s173_s29, 0  ;;  %p186_p1 = scmp.ne.s32.totalorder %s1328_s25, %s1324_s24 }
   0x5   : > { %p187_p2 = scmp.eq.s32.totalorder %s1419_s27, 4  ;;  %p1044_p3 = scmp.ge.s32.totalorder %s1332_s26, 1 }
   0x6   : > { %s1429_s8 = scalar_select %p174_p0, %s1328_s25, %s176_s30  }
   0x7   : > { %p1431_p4 = por %p187_p2, %p186_p1  ;;  %p246_p5 = scmp.lt.s32.totalorder %s1332_s26, 6 }
   0x9   : > { %p247_p6 = pnand %p1044_p3, %p246_p5 }
   0xa   : > { %s1442_s14 = sshll.u32 (!%p247_p6), %s1419_s27, 3  ;;  %s1048_s15 = sshll.u32 (!%p247_p6), %s1419_s27, 6 }
   0xb   : > { %250 = sbr.rel (%p247_p6) target bundleno = 673 (0x2a1), region = 48  ;;  %p286_p7 = scmp.lt.s32.totalorder (!%p247_p6), %s1442_s14, 32 }
   0xc   : > { %s310_s16 = ssub.s32 (!%p247_p6), 260, %s1048_s15  ;;  %s278_s10 = sand.u32 (!%p247_p6), 1, %s1324_s24  }
   0xd   : > { %s1045_s11 = sshll.u32 (!%p247_p6), %s278_s10, 6 }
  0x10   : > { %v353_v0 = vld [vmem:[%s1593_s1 + $0x8] sm:$0xff]  ;;  %v352_v1 = vld [vmem:[%s1593_s1] sm:$0xff]  ;;  %v300_v2 = vlaneseq  ;;  %v311_v4 = vstv %s310_s16  ;;  %v502_v5 = vld [vmem:[%s1595_s3 + $0x18] sm:$0xff]  ;;  %s287_s19 = scalar_select %p286_p7, %s1442_s14, 32  ;;  %vm361_vm1 = vcmask 130048   ;;  %vm510_vm9 = vcmask 261120  }
  0x11   : > { %1130 = vmatprep.subr.mxu0 %v353_v0  ;;  %1186 = vmatprep.subr.mxu1 %v353_v0  ;;  %v501_v29 = vld [vmem:[%s1595_s3 + $0x10] sm:$0xff]  ;;  %v500_v30 = vld [vmem:[%s1595_s3 + $0x8] sm:$0xff]  ;;  %v499_v31 = vld [vmem:[%s1595_s3] sm:$0xff]  ;;  %vm788_vm10 = vcmask 64512   ;;  %s1512_s16 = scalar_lea.vmem [#allocation2], %s1045_s11   ;;  %s805_s24 = ssub.s32 (%p1431_p4), 33, %s1442_s14 }
  0x12   : > { %1131 = vmatpush3.msra.mxu0 %v353_v0  ;;  %v301_v3 = vshrl.u32 %v300_v2, 7  ;;  %1188 = vmatpush3.msra.mxu1 %v353_v0  ;;  %s1047_s20 = sshll.u32 %s287_s19, 3  ;;  %v651_v32 = vld [vmem:[%s1597_s5 + $0x18] sm:$0xff]  ;;  %v1049_v33 = vld [vmem:[%s1594_s2] ss:$0 sm:$0xff]  ;;  %v650_v58 = vld [vmem:[%s1597_s5 + $0x10] sm:$0xff]  ;;  %s1538_s19 = scalar_lea.vmem (%p1431_p4), %s1599_s7, %s1048_s15  }
  0x13   : > { %1132 = vmatprep.subr.mxu0 %v352_v1  ;;  %1187 = vmatprep.subr.mxu1 %v352_v1  ;;  %s289_s23 = scalar_lea.vmem %s1592_s0, %s1047_s20  ;;  %v649_v59 = vld [vmem:[%s1597_s5 + $0x8] sm:$0xff]  ;;  %v648_v60 = vld [vmem:[%s1597_s5] sm:$0xff]  ;;  %p806_p8 = scmp.lt.s32.totalorder (%p1431_p4), %s805_s24, 8 }
  0x14   : > { %1133 = vmatpush3.msra.mxu0 %v352_v1  ;;  %vm312_vm0 = vcmp.lt.s32.totalorder %v301_v3, %v311_v4  ;;  %v302_v6 = vadd.s32 8, %v301_v3  ;;  %v303_v7 = vadd.s32 16, %v301_v3  ;;  %v304_v8 = vadd.s32 24, %v301_v3  ;;  %1189 = vmatpush3.msra.mxu1 %v352_v1  ;;  %v320_v13 = vld [vmem:[%s289_s23] sm:$0xff]  ;;  %v321_v14 = vld [vmem:[%s289_s23 + $0x8] sm:$0xff]  ;;  %v322_v15 = vld [vmem:[%s289_s23 + $0x10] sm:$0xff] }
  0x15   : > { %v305_v9 = vadd.s32 32, %v301_v3  ;;  %v306_v10 = vadd.s32 40, %v301_v3  ;;  %v307_v11 = vadd.s32 48, %v301_v3  ;;  %v308_v12 = vadd.s32 56, %v301_v3  ;;  %1146 = vmatprep.subr.mxu1 %v502_v5  ;;  %v323_v19 = vld [vmem:[%s289_s23 + $0x18] sm:$0xff]  ;;  %v324_v20 = vld [vmem:[%s289_s23 + $0x20] sm:$0xff]  ;;  %1166 = vmatprep.subr.mxu0 %v651_v32 }
  0x16   : > { %vm313_vm2 = vcmp.lt.s32.totalorder %v302_v6, %v311_v4  ;;  %vm314_vm3 = vcmp.lt.s32.totalorder %v303_v7, %v311_v4  ;;  %v344_v16 = vsel %vm312_vm0, %v320_v13, 0.0  ;;  %vm315_vm7 = vcmp.lt.s32.totalorder %v304_v8, %v311_v4  ;;  %v325_v21 = vld [vmem:[%s289_s23 + $0x28] sm:$0xff]  ;;  %v326_v24 = vld [vmem:[%s289_s23 + $0x30] sm:$0xff]  ;;  %v327_v25 = vld [vmem:[%s289_s23 + $0x38] sm:$0xff] }
  0x17   : > { %vm316_vm4 = vcmp.lt.s32.totalorder %v305_v9, %v311_v4  ;;  %vm317_vm5 = vcmp.lt.s32.totalorder %v306_v10, %v311_v4  ;;  %vm318_vm6 = vcmp.lt.s32.totalorder %v307_v11, %v311_v4  ;;  %v345_v17 = vsel %vm313_vm2, %v321_v14, 0.0  ;;  %1134 = vmatprep.mubr.msk.f32.mxu0 %vm361_vm1, %v344_v16  ;;  %v1058_v61 = vld [vmem:[%s1596_s4] ss:$0 sm:$0xff] }
  0x18   : > { %v346_v18 = vsel %vm314_vm3, %v322_v15, 0.0  ;;  %v348_v22 = vsel %vm316_vm4, %v324_v20, 0.0  ;;  %v349_v23 = vsel %vm317_vm5, %v325_v21, 0.0  ;;  %vm319_vm8 = vcmp.lt.s32.totalorder %v308_v12, %v311_v4  ;;  %1135 = vmatmul.mubr.msk.f32.vlgmr.msra.gmra.mxu0 %vm361_vm1, %v345_v17 }
  0x19   : > { %1140 = vmatprep.mubr.msk.f32.mxu1 %vm361_vm1, %v348_v22  ;;  %v350_v26 = vsel %vm318_vm6, %v326_v24, 0.0  ;;  %1137 = vmatprep.mubr.msk.f32.mxu0 %vm361_vm1, %v346_v18  ;;  %v347_v27 = vsel %vm315_vm7, %v323_v19, 0.0  ;;  %v351_v28 = vsel %vm319_vm8, %v327_v25, 0.0  ;;  %v1067_v22 = vld [vmem:[%s1598_s6] ss:$0 sm:$0xff] }
  0x1a   : > { %1141 = vmatmul.mubr.msk.f32.vlgmr.msra.gmra.mxu1 %vm361_vm1, %v349_v23  ;;  %1167 = vmatpush3.msra.mxu0 %v651_v32 }
  0x1b   : > { %1143 = vmatprep.mubr.msk.f32.mxu1 %vm361_vm1, %v350_v26  ;;  %1147 = vmatpush3.msra.mxu1 %v502_v5 }
  0x1c   : > { %1138 = vmatmul.mubr.msk.f32.gmra.mxu0 %vm361_vm1, %v347_v27  ;;  %1148 = vmatprep.subr.mxu1 %v501_v29 }
  0x1d   : > { %1149 = vmatpush3.msra.mxu1 %v501_v29  ;;  %1168 = vmatprep.subr.mxu0 %v650_v58 }
  0x1e   : > { %1144 = vmatmul.mubr.msk.f32.gmra.mxu1 %vm361_vm1, %v351_v28  ;;  %1150 = vmatprep.subr.mxu1 %v500_v30 }
  0x1f   : > { %1151 = vmatpush3.msra.mxu1 %v500_v30  ;;  %1169 = vmatpush3.msra.mxu0 %v650_v58 }
  0x20   : > { %1152 = vmatprep.subr.mxu1 %v499_v31  ;;  %1170 = vmatprep.subr.mxu0 %v649_v59 }
  0x21   : > { %1153 = vmatpush3.msra.mxu1 %v499_v31  ;;  %1171 = vmatpush3.msra.mxu0 %v649_v59 }
  0x22   : > { %1172 = vmatprep.subr.mxu0 %v648_v60 }
  0x23   : > { %1173 = vmatpush3.msra.mxu0 %v648_v60 }
  0xd8   : > { %v1136_v34 = vpop.f32.mrf.mxu0 }
  0xd9   : > { %v458_v36 = vadd.f32 %v1136_v34, %v1049_v33 }
  0xda   : > { %v1142_v35 = vpop.f32.mrf.mxu1  ;;  %v452_v37 = vpop.f32.mrf.mxu0 }
  0xdb   : > { %v453_v38 = vadd.f32 %v1049_v33, %v452_v37  ;;  %v492_v44 = vmax.f32 %v458_v36, 0.0  ;;  %v478_v53 = vadd.f32 %v1142_v35, %v1049_v33 }
  0xdc   : > { %v472_v39 = vpop.f32.mrf.mxu1  ;;  %v1139_v40 = vpop.f32.mrf.mxu0 }
  0xdd   : > { %v491_v41 = vmax.f32 %v453_v38, 0.0  ;;  %v473_v42 = vadd.f32 %v1049_v33, %v472_v39  ;;  %v468_v45 = vadd.f32 %v1139_v40, %v1049_v33  ;;  %v496_v55 = vmax.f32 %v478_v53, 0.0 }
  0xde   : > { %v1145_v43 = vpop.f32.mrf.mxu1  ;;  %v462_v46 = vpop.f32.mrf.mxu0 }
  0xdf   : > { %v463_v47 = vadd.f32 %v1049_v33, %v462_v46  ;;  %1154 = vmatprep.mubr.msk.f32.mxu1 %vm510_vm9, %v491_v41  ;;  %v495_v50 = vmax.f32 %v473_v42, 0.0  ;;  %v494_v52 = vmax.f32 %v468_v45, 0.0  ;;  %v488_v56 = vadd.f32 %v1145_v43, %v1049_v33 }
  0xe0   : > { %v482_v48 = vpop.f32.mrf.mxu1  ;;  %1155 = vmatmul.mubr.msk.f32.vlgmr.msra.gmra.mxu1 %vm510_vm9, %v492_v44 }
  0xe1   : > { %v493_v49 = vmax.f32 %v463_v47, 0.0  ;;  %v483_v51 = vadd.f32 %v1049_v33, %v482_v48  ;;  %v498_v57 = vmax.f32 %v488_v56, 0.0 }
  0xe3   : > { %1157 = vmatprep.mubr.msk.f32.mxu1 %vm510_vm9, %v493_v49  ;;  %v497_v54 = vmax.f32 %v483_v51, 0.0 }
  0xe4   : > { %1158 = vmatmul.mubr.msk.f32.gmra.mxu1 %vm510_vm9, %v494_v52 }
  0xe5   : > { %1160 = vmatprep.mubr.msk.f32.mxu1 %vm510_vm9, %v495_v50 }
  0xe8   : > { %1161 = vmatmul.mubr.msk.f32.gmra.mxu1 %vm510_vm9, %v496_v55 }
  0xe9   : > { %1163 = vmatprep.mubr.msk.f32.mxu1 %vm510_vm9, %v497_v54 }
  0xec   : > { %1164 = vmatmul.mubr.msk.f32.gmra.mxu1 %vm510_vm9, %v498_v57 }
 0x1a0   : > { %v1156_v62 = vpop.f32.mrf.mxu1 }
 0x1a1   : > { %v607_v63 = vadd.f32 %v1156_v62, %v1058_v61 }
 0x1a2   : > { %v601_v0 = vpop.f32.mrf.mxu1 }
 0x1a3   : > { %v602_v1 = vadd.f32 %v1058_v61, %v601_v0  ;;  %v641_v4 = vmax.f32 %v607_v63, 0.0 }
 0x1a4   : > { %v1159_v2 = vpop.f32.mrf.mxu1 }
 0x1a5   : > { %v640_v3 = vmax.f32 %v602_v1, 0.0  ;;  %v617_v5 = vadd.f32 %v1159_v2, %v1058_v61 }
 0x1a6   : > { %v611_v6 = vpop.f32.mrf.mxu1 }
 0x1a7   : > { %v612_v7 = vadd.f32 %v1058_v61, %v611_v6  ;;  %1174 = vmatprep.mubr.msk.f32.mxu0 %vm510_vm9, %v640_v3  ;;  %v643_v10 = vmax.f32 %v617_v5, 0.0 }
 0x1a8   : > { %v1162_v8 = vpop.f32.mrf.mxu1  ;;  %1175 = vmatmul.mubr.msk.f32.vlgmr.msra.gmra.mxu0 %vm510_vm9, %v641_v4 }
 0x1a9   : > { %v642_v9 = vmax.f32 %v612_v7, 0.0  ;;  %v627_v11 = vadd.f32 %v1162_v8, %v1058_v61 }
 0x1aa   : > { %v621_v12 = vpop.f32.mrf.mxu1 }
 0x1ab   : > { %v622_v13 = vadd.f32 %v1058_v61, %v621_v12  ;;  %1177 = vmatprep.mubr.msk.f32.mxu0 %vm510_vm9, %v642_v9  ;;  %v645_v16 = vmax.f32 %v627_v11, 0.0 }
 0x1ac   : > { %v1165_v14 = vpop.f32.mrf.mxu1  ;;  %1178 = vmatmul.mubr.msk.f32.gmra.mxu0 %vm510_vm9, %v643_v10 }
 0x1ad   : > { %v644_v15 = vmax.f32 %v622_v13, 0.0  ;;  %v637_v17 = vadd.f32 %v1165_v14, %v1058_v61 }
 0x1ae   : > { %v631_v18 = vpop.f32.mrf.mxu1 }
 0x1af   : > { %v632_v19 = vadd.f32 %v1058_v61, %v631_v18  ;;  %1180 = vmatprep.mubr.msk.f32.mxu0 %vm510_vm9, %v644_v15  ;;  %v647_v21 = vmax.f32 %v637_v17, 0.0 }
 0x1b0   : > { %1181 = vmatmul.mubr.msk.f32.gmra.mxu0 %vm510_vm9, %v645_v16 }
 0x1b1   : > { %v646_v20 = vmax.f32 %v632_v19, 0.0 }
 0x1b3   : > { %1183 = vmatprep.mubr.msk.f32.mxu0 %vm510_vm9, %v646_v20 }
 0x1b4   : > { %1184 = vmatmul.mubr.msk.f32.gmra.mxu0 %vm510_vm9, %v647_v21 }
 0x268   : > { %v1176_v23 = vpop.f32.mrf.mxu0 }
 0x269   : > { %v755_v24 = vadd.f32 %v1176_v23, %v1067_v22 }
 0x26a   : > { %v749_v25 = vpop.f32.mrf.mxu0 }
 0x26b   : > { %790 = vst.msk [vmem:[%s1512_s16 + $0x8] sm:$0xff] %vm788_vm10, %v755_v24  ;;  %v750_v26 = vadd.f32 %v1067_v22, %v749_v25 }
 0x26c   : > { %v1179_v27 = vpop.f32.mrf.mxu0 }
 0x26d   : > { %789 = vst.msk [vmem:[%s1512_s16] sm:$0xff] %vm788_vm10, %v750_v26  ;;  %v765_v28 = vadd.f32 %v1179_v27, %v1067_v22 }
 0x26e   : > { %v759_v29 = vpop.f32.mrf.mxu0 }
 0x26f   : > { %792 = vst.msk [vmem:[%s1512_s16 + $0x18] sm:$0xff] %vm788_vm10, %v765_v28  ;;  %v760_v30 = vadd.f32 %v1067_v22, %v759_v29 }
 0x270   : > { %v1182_v31 = vpop.f32.mrf.mxu0 }
 0x271   : > { %791 = vst.msk [vmem:[%s1512_s16 + $0x10] sm:$0xff] %vm788_vm10, %v760_v30  ;;  %v775_v32 = vadd.f32 %v1182_v31, %v1067_v22 }
 0x272   : > { %v769_v33 = vpop.f32.mrf.mxu0 }
 0x273   : > { %794 = vst.msk [vmem:[%s1512_s16 + $0x28] sm:$0xff] %vm788_vm10, %v775_v32  ;;  %v770_v34 = vadd.f32 %v1067_v22, %v769_v33 }
 0x274   : > { %v1185_v35 = vpop.f32.mrf.mxu0 }
 0x275   : > { %793 = vst.msk [vmem:[%s1512_s16 + $0x20] sm:$0xff] %vm788_vm10, %v770_v34  ;;  %v785_v36 = vadd.f32 %v1185_v35, %v1067_v22  ;;  %803 = sbr.rel (!%p1431_p4) target bundleno = 673 (0x2a1), region = 52 }
 0x276   : > { %v779_v37 = vpop.f32.mrf.mxu0 }
 0x277   : > { %796 = vst.msk [vmem:[%s1512_s16 + $0x38] sm:$0xff] %vm788_vm10, %v785_v36  ;;  %v780_v38 = vadd.f32 %v1067_v22, %v779_v37 }
 0x279   : > { %795 = vst.msk [vmem:[%s1512_s16 + $0x30] sm:$0xff] %vm788_vm10, %v780_v38 }
 0x27a   : > { %s1608_s24 = smov (!%p806_p8, %s805_s24), 8 }
 0x27b   : > { %s1078_s20 = sshll.u32 %s1608_s24, 7 }
 0x27c   : > { %p1081_p9 = scmp.eq.s32.totalorder %s1078_s20, 0 }
 0x27d   : > { %s1544_s21 = sshrl.u32 (!%p1081_p9), %s1608_s24, 3 }
 0x27e   : > { %814 = sbr.rel (%p1081_p9) target bundleno = 673 (0x2a1), region = 56  ;;  %p1082_p10 = scmp.le.s32.totalorder (!%p1081_p9), %s1544_s21, 0 }
 0x283   : > { %997 = sbr.rel (%p1082_p10) target bundleno = 656 (0x290), region = 132  ;;  %s1601_s27 = smov (!%p1082_p10), %s1538_s19 }
 0x284   : > { %s1602_s9 = smov (!%p1082_p10), %s1512_s16  ;;  %s1553_s14 = smov (!%p1082_p10), 0  }
 0x285   : > { %s1555_s15 = smov (!%p1082_p10), 0  }
 0x288 LB: >> { %v891_v39 = vld [vmem:[%s1340_s9] sm:$0xff]  ;;  %v893_v40 = vld [vmem:[%s1340_s9 + $0x8] sm:$0xff]  ;;  %v895_v41 = vld [vmem:[%s1340_s9 + $0x10] sm:$0xff]  ;;  %s907_s22 = sadd.s32 1, %s1344_s14  ;;  %s885_s15 = sadd.s32 1, %s1348_s15   ;;  %s1348_s15 = sphi %s1555_s15, %s885_s15   ;;  %s1344_s14 = sphi %s1553_s14, %s1603_s14   ;;  %s1340_s9 = sphi %s1602_s9, %s912_s9   ;;  %s1336_s27 = sphi %s1601_s27, %s913_s27  }
 0x289   : >> { %892 = vst [vmem:[%s1336_s27] sm:$0xff] %v891_v39  ;;  %894 = vst [vmem:[%s1336_s27 + $0x8] sm:$0xff] %v893_v40  ;;  %v897_v42 = vld [vmem:[%s1340_s9 + $0x18] sm:$0xff]  ;;  %v899_v43 = vld [vmem:[%s1340_s9 + $0x20] sm:$0xff]  ;;  %p908_p11 = scmp.ge.s32.totalorder %s907_s22, %s1544_s21  ;;  %p884_p12 = scmp.ge.s32.totalorder %s885_s15, %s1544_s21 }
 0x28a   : >> { %896 = vst [vmem:[%s1336_s27 + $0x10] sm:$0xff] %v895_v41  ;;  %v901_v44 = vld [vmem:[%s1340_s9 + $0x28] sm:$0xff]  ;;  %898 = vst [vmem:[%s1336_s27 + $0x18] sm:$0xff] %v897_v42  ;;  %v903_v45 = vld [vmem:[%s1340_s9 + $0x30] sm:$0xff] }
 0x28b   : >> { %900 = vst [vmem:[%s1336_s27 + $0x20] sm:$0xff] %v899_v43  ;;  %902 = vst [vmem:[%s1336_s27 + $0x28] sm:$0xff] %v901_v44  ;;  %v905_v46 = vld [vmem:[%s1340_s9 + $0x38] sm:$0xff]  ;;  %s1610_s22 = smov (%p908_p11, %s907_s22), 0  ;;  %887 = sbr.rel (!%p884_p12) target bundleno = 648 (0x288), region = 138 }
 0x28c   : >> { %904 = vst [vmem:[%s1336_s27 + $0x30] sm:$0xff] %v903_v45  ;;  %906 = vst [vmem:[%s1336_s27 + $0x38] sm:$0xff] %v905_v46  ;;  %s1083_s23 = sshll.u32 %s1610_s22, 6  ;;  %s1603_s14 = smov %s1610_s22 }
 0x28d   : >> { %s912_s9 = scalar_lea.vmem %s1512_s16, %s1083_s23 [#allocation2]   ;;  %s913_s27 = scalar_lea.vmem %s1538_s19, %s1083_s23  }
 0x290 PF: > { %s1574_s26 = sand.u32 7, %s1608_s24   ;;  %s1094_s29 = sshll.u32 %s1544_s21, 6 }
 0x291   : > { %s918_s30 = scalar_lea.vmem %s1512_s16, %s1094_s29 [#allocation2]   ;;  %s920_s10 = scalar_lea.vmem %s1538_s19, %s1094_s29  }
 0x292   : > { %p1088_p13 = scmp.le.s32.totalorder %s1574_s26, 0 }
 0x293   : > { %s1350_s11 = smov (!%p1088_p13), %s920_s10   ;;  %s1354_s12 = smov (!%p1088_p13), %s918_s30  }
 0x294   : > { %1011 = sbr.rel (%p1088_p13) target bundleno = 673 (0x2a1), region = 143  ;;  %s1358_s13 = smov (!%p1088_p13), 0  }
 0x295   : > { %s1362_s17 = smov (!%p1088_p13), 0  }
 0x299 LB: >> { %v930_v47 = vld [vmem:[%s1356_s12] sm:$0xff]  ;;  %s932_s24 = sadd.s32 1, %s1360_s13  ;;  %s924_s17 = sadd.s32 1, %s1364_s17   ;;  %s1364_s17 = sphi %s1362_s17, %s924_s17   ;;  %s1360_s13 = sphi %s1358_s13, %s1359_s13   ;;  %s1356_s12 = sphi %s1354_s12, %s937_s12   ;;  %s1352_s11 = sphi %s1350_s11, %s938_s11  }
 0x29a   : >> { %931 = vst [vmem:[%s1352_s11] sm:$0xff] %v930_v47  ;;  %p933_p0 = scmp.ge.s32.totalorder %s932_s24, %s1574_s26  ;;  %p923_p1 = scmp.ge.s32.totalorder %s924_s17, %s1574_s26 }
 0x29c   : >> { %s1612_s24 = smov (%p933_p0, %s932_s24), 0  ;;  %926 = sbr.rel (!%p923_p1) target bundleno = 665 (0x299), region = 149 }
 0x29d   : >> { %s1089_s16 = sshll.u32 %s1612_s24, 3  ;;  %s1359_s13 = smov %s1612_s24  }
 0x29e   : >> { %s937_s12 = scalar_lea.vmem %s918_s30, %s1089_s16 [#allocation2]   ;;  %s938_s11 = scalar_lea.vmem %s920_s10, %s1089_s16  }
 0x2a1 PF: > { %p14_p2 = scmp.ge.s32.totalorder %s1421_s28, 7   ;;  %s1604_s24 = smov %s1328_s25 }
 0x2a2   : > { %s1605_s25 = smov %s1429_s8  ;;  %s1606_s26 = smov %s1421_s28 }
 0x2a3   :  { %16 = sbr.rel (!%p14_p2) target bundleno = 2 (0x2), region = 160 }

</bundles_post_ra>
